<compile_context>
chip_gen: v7x
topology: tpu7x:2x2x1
jax: 0.10.0
libtpu: 0.0.40
codegen_flags: <defaults>
</compile_context>

<pallas_src>
import functools
import math

import jax
import jax.numpy as jnp
from jax.experimental import pallas as pl
from jax.experimental.pallas import tpu as pltpu


# ---------------------------------------------------------------- pass 1 ----
def transform_kernel(h_ref, w_ref, norm_ref, msg_ref):
    # Feature transform on the MXU + source-norm scaling, once per row tile.
    hw = jnp.dot(h_ref[...], w_ref[...], preferred_element_type=jnp.float32)
    msg_ref[...] = (hw * norm_ref[...]).astype(msg_ref.dtype)


# ---------------------------------------------------------------- pass 2 ----
def aggregate_kernel(adj_ref, msg_ref, norm_dst_ref, bias_ref, out_ref, acc_ref):
    k = pl.program_id(1)

    @pl.when(k == 0)
    def _():
        acc_ref[...] = jnp.zeros_like(acc_ref)

    # adj[v, u] holds (edge_weight or 1.0) if u -> v, else 0.  f32 accumulation.
    acc_ref[...] += jnp.dot(adj_ref[...], msg_ref[...],
                            preferred_element_type=jnp.float32)

    @pl.when(k == pl.num_programs(1) - 1)
    def _():
        # Destination norm, bias, activation (ReLU) — only once per output tile.
        out = acc_ref[...] * norm_dst_ref[...] + bias_ref[...]
        out_ref[...] = jnp.maximum(out, 0.0).astype(out_ref.dtype)


# ---------------------------------------------------------------- wrapper ---
@functools.partial(jax.jit, static_argnames=("tile_m", "tile_k", "agg_dtype"))
def graph_conv(h, weight, bias, adj, norm, *, tile_m=128, tile_k=128,
               agg_dtype=jnp.bfloat16):
    """GraphConv forward.

    adj[v, u] = edge_weight(u->v) (or 1.0) if there is an edge u -> v, else 0.
    `edge_weight` is folded into `adj` by the caller (glue).  ReLU activation.
    """
    N, f_in = h.shape
    f_out = weight.shape[1]
    assert tile_m % 8 == 0 and tile_k % 128 == 0

    # Lane-dense feature width: pad F_out up to a multiple of 128 so the output
    # (and the aggregation matmul's result columns) fully use the 128 lanes.
    f_pad = pl.cdiv(f_out, 128) * 128
    # Pad node dimension so both the dst (tile_m) and src (tile_k) tilings
    # divide it (handles arbitrary N; padded rows/cols are zero).
    n_align = math.lcm(tile_m, tile_k)
    n_pad = pl.cdiv(N, n_align) * n_align

    f32 = jnp.float32
    h_p = jnp.zeros((n_pad, f_in), f32).at[:N].set(h.astype(f32))
    w_p = jnp.zeros((f_in, f_pad), f32).at[:, :f_out].set(weight.astype(f32))
    b_p = jnp.zeros((1, f_pad), f32).at[0, :f_out].set(bias.astype(f32))
    norm_p = jnp.zeros((n_pad, 1), f32).at[:N, 0].set(norm.astype(f32))
    # Stream the dense adjacency in bf16 by default — pass 2 is HBM-bandwidth
    # bound on adj, so fewer bytes ≈ linear speedup (f32 accumulation keeps
    # the reduction exact up to the bf16 input rounding).
    adj_p = jnp.zeros((n_pad, n_pad), agg_dtype).at[:N, :N].set(
        adj.astype(agg_dtype))

    def cparams(sem):
        return pltpu.CompilerParams(
            dimension_semantics=sem,
            vmem_limit_bytes=32 * 1024 * 1024,  # safe on v5e/v6e/v7x; tiles tiny
        )

    # ---- pass 1: msg = (H @ W) * norm_src, computed exactly once ----------
    msg = pl.pallas_call(
        transform_kernel,
        out_shape=jax.ShapeDtypeStruct((n_pad, f_pad), agg_dtype),
        grid_spec=pltpu.PrefetchScalarGridSpec(
            num_scalar_prefetch=0,
            grid=(n_pad // tile_k,),
            in_specs=[
                pl.BlockSpec((tile_k, f_in), lambda i: (i, 0)),   # h row tile
                pl.BlockSpec((f_in, f_pad), lambda i: (0, 0)),    # weight (full)
                pl.BlockSpec((tile_k, 1), lambda i: (i, 0)),      # source norms
            ],
            out_specs=pl.BlockSpec((tile_k, f_pad), lambda i: (i, 0)),
        ),
        compiler_params=cparams(("parallel",)),
    )(h_p, w_p, norm_p)

    # ---- pass 2: agg = adj @ msg (K-tiled), then *norm_dst + bias, ReLU ----
    out_p = pl.pallas_call(
        aggregate_kernel,
        out_shape=jax.ShapeDtypeStruct((n_pad, f_pad), h.dtype),
        grid_spec=pltpu.PrefetchScalarGridSpec(
            num_scalar_prefetch=0,
            grid=(n_pad // tile_m, n_pad // tile_k),
            in_specs=[
                pl.BlockSpec((tile_m, tile_k), lambda i, k: (i, k)),  # adj tile
                pl.BlockSpec((tile_k, f_pad), lambda i, k: (k, 0)),   # msg tile
                pl.BlockSpec((tile_m, 1), lambda i, k: (i, 0)),       # dst norms
                pl.BlockSpec((1, f_pad), lambda i, k: (0, 0)),        # bias
            ],
            out_specs=pl.BlockSpec((tile_m, f_pad), lambda i, k: (i, 0)),
            scratch_shapes=[pltpu.VMEM((tile_m, f_pad), jnp.float32)],
        ),
        compiler_params=cparams(("parallel", "arbitrary")),
    )(adj_p, msg, norm_p, b_p)

    return out_p[:N, :f_out]


# ---------------------------------------------------------------- reference -
def graph_conv_ref(h, weight, bias, adj, norm):
    hw = h @ weight
    msg = hw * norm[:, None]
    agg = adj @ msg
    out = agg * norm[:, None] + bias[None, :]
    return jnp.maximum(out, 0.0)


if __name__ == "__main__":
    key = jax.random.PRNGKey(0)
    k_h, k_w, k_b, k_adj, k_ew = jax.random.split(key, 5)

    # N deliberately NOT a multiple of 128 to exercise the padded/cdiv path.
    N, F_IN, F_OUT = 200, 32, 32

    # Node features.
    h = jax.random.normal(k_h, (N, F_IN), dtype=jnp.float32)

    # Parameters: weight ~ xavier_uniform_; module init for bias is zeros, but a
    # non-zero bias is used here to exercise the bias-add path.
    bound = (6.0 / (F_IN + F_OUT)) ** 0.5
    weight = jax.random.uniform(k_w, (F_IN, F_OUT), jnp.float32, -bound, bound)
    bias = 0.1 * jax.random.normal(k_b, (F_OUT,), dtype=jnp.float32)

    # Synthetic graph: adj[v, u] = 1 iff edge u -> v.
    adj = (jax.random.uniform(k_adj, (N, N)) < 0.1).astype(jnp.float32)
    # norm = 1 / sqrt(in-degree)   (as from g.get_ndata('norm')).
    in_deg = jnp.maximum(adj.sum(axis=1), 1.0)
    norm = 1.0 / jnp.sqrt(in_deg)

    # --- edge_weight=None, exact f32 aggregation (tight check) -------------
    out_f32 = jax.block_until_ready(
        graph_conv(h, weight, bias, adj, norm, agg_dtype=jnp.float32))
    ref = graph_conv_ref(h, weight, bias, adj, norm)
    assert jnp.allclose(out_f32, ref, atol=1e-4, rtol=1e-4)

    # --- edge_weight=None, default bf16 aggregation (perf path) ------------
    out_bf = jax.block_until_ready(graph_conv(h, weight, bias, adj, norm))
    assert jnp.allclose(out_bf, ref, atol=3e-2, rtol=3e-2)

    # --- edge_weight path: weights fold into the adjacency matrix (glue) ---
    edge_w = jax.random.uniform(k_ew, (N, N), dtype=jnp.float32)
    adj_w = adj * edge_w
    out_w = jax.block_until_ready(graph_conv(h, weight, bias, adj_w, norm))
    ref_w = graph_conv_ref(h, weight, bias, adj_w, norm)
    assert jnp.allclose(out_w, ref_w, atol=3e-2, rtol=3e-2)

    print("KERNEL_OK")
</pallas_src>

<mosaic_0001>
module attributes {stable_mosaic.version = 11 : i64} {
  func.func @aggregate_kernel(%arg0: i32, %arg1: i32, %arg2: memref<128x128xf32, #tpu.memory_space<vmem>>, %arg3: memref<128x128xf32, #tpu.memory_space<vmem>>, %arg4: memref<128x1xf32, #tpu.memory_space<vmem>>, %arg5: memref<1x128xf32, #tpu.memory_space<vmem>>, %arg6: memref<128x128xf32, #tpu.memory_space<vmem>>, %arg7: memref<128x128xf32, #tpu.memory_space<vmem>>) attributes {dimension_semantics = [#tpu.dimension_semantics<parallel>, #tpu.dimension_semantics<arbitrary>], iteration_bounds = array<i64: 2, 2>, scalar_prefetch = 0 : i64, scratch_operands = 1 : i64, tpu.core_type = #tpu.core_type<tc>, window_params = [{transform_indices = @transform_0, window_bounds = array<i64: 128, 128>}, {transform_indices = @transform_1, window_bounds = array<i64: 128, 128>}, {transform_indices = @transform_2, window_bounds = array<i64: 128, 1>}, {pipeline_mode = #tpu.pipeline_mode<synchronous>, transform_indices = @transform_3, window_bounds = array<i64: 1, 128>}, {transform_indices = @transform_4, window_bounds = array<i64: 128, 128>}]} {
    %c0_i32 = arith.constant 0 : i32
    %0 = arith.cmpi eq, %arg1, %c0_i32 : i32
    %1 = arith.extui %0 : i1 to i32
    %c0_i32_0 = arith.constant 0 : i32
    %2 = arith.cmpi ne, %1, %c0_i32_0 : i32
    scf.if %2 {
      %cst_9 = arith.constant 0.000000e+00 : f32
      %12 = vector.broadcast %cst_9 : f32 to vector<128x128xf32>
      %c0_10 = arith.constant 0 : index
      %c0_11 = arith.constant 0 : index
      %13 = vector.load %arg7[%c0_10, %c0_11] : memref<128x128xf32, #tpu.memory_space<vmem>>, vector<128x128xf32>
      tpu.vector_store %arg7[%c0_10, %c0_11], %12 {strides = array<i32>} : memref<128x128xf32, #tpu.memory_space<vmem>>, vector<128x128xf32>,
    } else {
    }
    %c0 = arith.constant 0 : index
    %c0_1 = arith.constant 0 : index
    %3 = vector.load %arg7[%c0, %c0_1] : memref<128x128xf32, #tpu.memory_space<vmem>>, vector<128x128xf32>
    %c0_2 = arith.constant 0 : index
    %c0_3 = arith.constant 0 : index
    %4 = vector.load %arg2[%c0_2, %c0_3] : memref<128x128xf32, #tpu.memory_space<vmem>>, vector<128x128xf32>
    %c0_4 = arith.constant 0 : index
    %c0_5 = arith.constant 0 : index
    %5 = vector.load %arg3[%c0_4, %c0_5] : memref<128x128xf32, #tpu.memory_space<vmem>>, vector<128x128xf32>
    %cst = arith.constant dense<0.000000e+00> : vector<128x128xf32>
    %6 = tpu.matmul %4, %5, %cst {dimension_numbers = #tpu.dot_dimension_numbers<[1], [0], [0], [1], [0, 0, 1, 1], [], []>} : vector<128x128xf32>, vector<128x128xf32>, vector<128x128xf32> -> vector<128x128xf32>
    %7 = arith.addf %3, %6 : vector<128x128xf32>
    %c0_6 = arith.constant 0 : index
    %c0_7 = arith.constant 0 : index
    %8 = vector.load %arg7[%c0_6, %c0_7] : memref<128x128xf32, #tpu.memory_space<vmem>>, vector<128x128xf32>
    tpu.vector_store %arg7[%c0_6, %c0_7], %7 {strides = array<i32>} : memref<128x128xf32, #tpu.memory_space<vmem>>, vector<128x128xf32>,
    %c1_i32 = arith.constant 1 : i32
    %9 = arith.cmpi eq, %arg1, %c1_i32 : i32
    %10 = arith.extui %9 : i1 to i32
    %c0_i32_8 = arith.constant 0 : i32
    %11 = arith.cmpi ne, %10, %c0_i32_8 : i32
    scf.if %11 {
      %c0_9 = arith.constant 0 : index
      %c0_10 = arith.constant 0 : index
      %12 = vector.load %arg7[%c0_9, %c0_10] : memref<128x128xf32, #tpu.memory_space<vmem>>, vector<128x128xf32>
      %c0_11 = arith.constant 0 : index
      %c0_12 = arith.constant 0 : index
      %13 = vector.load %arg4[%c0_11, %c0_12] : memref<128x1xf32, #tpu.memory_space<vmem>>, vector<128x1xf32>
      %14 = vector.broadcast %13 : vector<128x1xf32> to vector<128x128xf32>
      %15 = arith.mulf %12, %14 : vector<128x128xf32>
      %c0_13 = arith.constant 0 : index
      %c0_14 = arith.constant 0 : index
      %16 = vector.load %arg5[%c0_13, %c0_14] : memref<1x128xf32, #tpu.memory_space<vmem>>, vector<1x128xf32>
      %17 = vector.broadcast %16 : vector<1x128xf32> to vector<128x128xf32>
      %18 = arith.addf %15, %17 : vector<128x128xf32>
      %cst_15 = arith.constant 0.000000e+00 : f32
      %19 = vector.broadcast %cst_15 : f32 to vector<128x128xf32>
      %20 = arith.maximumf %18, %19 : vector<128x128xf32>
      %c0_16 = arith.constant 0 : index
      %c0_17 = arith.constant 0 : index
      %21 = vector.load %arg6[%c0_16, %c0_17] : memref<128x128xf32, #tpu.memory_space<vmem>>, vector<128x128xf32>
      tpu.vector_store %arg6[%c0_16, %c0_17], %20 {strides = array<i32>} : memref<128x128xf32, #tpu.memory_space<vmem>>, vector<128x128xf32>,
    } else {
    }
    return
  }
  func.func @transform_0(%arg0: i32, %arg1: i32) -> (i32, i32) {
    %c0_i32 = arith.constant 0 : i32
    return %arg0, %arg1 : i32, i32
  }
  func.func @transform_1(%arg0: i32, %arg1: i32) -> (i32, i32) {
    %c0_i32 = arith.constant 0 : i32
    %c0_i32_0 = arith.constant 0 : i32
    return %arg1, %c0_i32 : i32, i32
  }
  func.func @transform_2(%arg0: i32, %arg1: i32) -> (i32, i32) {
    %c0_i32 = arith.constant 0 : i32
    %c0_i32_0 = arith.constant 0 : i32
    return %arg0, %c0_i32 : i32, i32
  }
  func.func @transform_3(%arg0: i32, %arg1: i32) -> (i32, i32) {
    %c0_i32 = arith.constant 0 : i32
    %c0_i32_0 = arith.constant 0 : i32
    %c0_i32_1 = arith.constant 0 : i32
    return %c0_i32, %c0_i32_0 : i32, i32
  }
  func.func @transform_4(%arg0: i32, %arg1: i32) -> (i32, i32) {
    %c0_i32 = arith.constant 0 : i32
    %c0_i32_0 = arith.constant 0 : i32
    return %arg0, %c0_i32 : i32, i32
  }
}

module attributes {stable_mosaic.version = 11 : i64} {
  func.func @transform_kernel(%arg0: i32, %arg1: memref<128x32xf32, #tpu.memory_space<vmem>>, %arg2: memref<32x128xf32, #tpu.memory_space<vmem>>, %arg3: memref<128x1xf32, #tpu.memory_space<vmem>>, %arg4: memref<128x128xf32, #tpu.memory_space<vmem>>) attributes {dimension_semantics = [#tpu.dimension_semantics<parallel>], iteration_bounds = array<i64: 2>, scalar_prefetch = 0 : i64, scratch_operands = 0 : i64, tpu.core_type = #tpu.core_type<tc>, window_params = [{transform_indices = @transform_0, window_bounds = array<i64: 128, 32>}, {pipeline_mode = #tpu.pipeline_mode<synchronous>, transform_indices = @transform_1, window_bounds = array<i64: 32, 128>}, {transform_indices = @transform_2, window_bounds = array<i64: 128, 1>}, {transform_indices = @transform_3, window_bounds = array<i64: 128, 128>}]} {
    %c0 = arith.constant 0 : index
    %c0_0 = arith.constant 0 : index
    %0 = vector.load %arg1[%c0, %c0_0] : memref<128x32xf32, #tpu.memory_space<vmem>>, vector<128x32xf32>
    %c0_1 = arith.constant 0 : index
    %c0_2 = arith.constant 0 : index
    %1 = vector.load %arg2[%c0_1, %c0_2] : memref<32x128xf32, #tpu.memory_space<vmem>>, vector<32x128xf32>
    %cst = arith.constant dense<0.000000e+00> : vector<128x128xf32>
    %2 = tpu.matmul %0, %1, %cst {dimension_numbers = #tpu.dot_dimension_numbers<[1], [0], [0], [1], [0, 0, 1, 1], [], []>} : vector<128x32xf32>, vector<32x128xf32>, vector<128x128xf32> -> vector<128x128xf32>
    %c0_3 = arith.constant 0 : index
    %c0_4 = arith.constant 0 : index
    %3 = vector.load %arg3[%c0_3, %c0_4] : memref<128x1xf32, #tpu.memory_space<vmem>>, vector<128x1xf32>
    %4 = vector.broadcast %3 : vector<128x1xf32> to vector<128x128xf32>
    %5 = arith.mulf %2, %4 : vector<128x128xf32>
    %c0_5 = arith.constant 0 : index
    %c0_6 = arith.constant 0 : index
    %6 = vector.load %arg4[%c0_5, %c0_6] : memref<128x128xf32, #tpu.memory_space<vmem>>, vector<128x128xf32>
    tpu.vector_store %arg4[%c0_5, %c0_6], %5 {strides = array<i32>} : memref<128x128xf32, #tpu.memory_space<vmem>>, vector<128x128xf32>,
    return
  }
  func.func @transform_0(%arg0: i32) -> (i32, i32) {
    %c0_i32 = arith.constant 0 : i32
    %c0_i32_0 = arith.constant 0 : i32
    return %arg0, %c0_i32 : i32, i32
  }
  func.func @transform_1(%arg0: i32) -> (i32, i32) {
    %c0_i32 = arith.constant 0 : i32
    %c0_i32_0 = arith.constant 0 : i32
    %c0_i32_1 = arith.constant 0 : i32
    return %c0_i32, %c0_i32_0 : i32, i32
  }
  func.func @transform_2(%arg0: i32) -> (i32, i32) {
    %c0_i32 = arith.constant 0 : i32
    %c0_i32_0 = arith.constant 0 : i32
    return %arg0, %c0_i32 : i32, i32
  }
  func.func @transform_3(%arg0: i32) -> (i32, i32) {
    %c0_i32 = arith.constant 0 : i32
    %c0_i32_0 = arith.constant 0 : i32
    return %arg0, %c0_i32 : i32, i32
  }
}

</mosaic_0001>

<bundles_post_ra>
// kernel: graph_conv.2
= control target key start
LH: loop header
LB: loop body
LE: loop exit
PB: predicated region body
PF: predicated region fallthrough
CT: control target
= control target key end

     0   :  { %s739_s12 = smov 0   ;;  %s846_s0 = inlined_call_operand.vmem [shape: f32[256,32], index: 0, kind: input, shape index: {}]   ;;  %s847_s1 = inlined_call_operand.vmem [shape: f32[32,128], index: 1, kind: input, shape index: {}]   ;;  %s848_s2 = inlined_call_operand.vmem [shape: f32[256,1], index: 2, kind: input, shape index: {}]   ;;  %s849_s3 = inlined_call_operand.vmem [shape: f32[256,128], index: 3, kind: output, shape index: {}]  }
   0x1 LB: > { %s606_s13 = sadd.s32 4294967295, %s716_s12   ;;  %p610_p0 = scmp.ge.s32.totalorder %s716_s12, 1  ;;  %s716_s12 = sphi %s739_s12, %s13_s12  }
   0x2   : > { %p149_p1 = scmp.lt.s32.totalorder %s716_s12, 3 }
   0x4   : > { %p150_p2 = pnand %p610_p0, %p149_p1 }
   0x5   : > { %v212_v0 = vld [vmem:[%s847_s1] sm:$0xff] (!%p150_p2)  ;;  %v213_v1 = vld [vmem:[%s847_s1 + $0x8] sm:$0xff] (!%p150_p2)  ;;  %v214_v2 = vld [vmem:[%s847_s1 + $0x10] sm:$0xff] (!%p150_p2)  ;;  %s611_s20 = sshll.u32 (!%p150_p2), %s606_s13, 4  ;;  %v718_v5 = vmov (!%p150_p2), 0   ;;  %vm216_vm0 = vcmask (!%p150_p2), 261120  }
   0x6   : > { %153 = sbr.rel (%p150_p2) target bundleno = 247 (0xf7), region = 32  ;;  %v687_v3 = vpack.c.bf16 (!%p150_p2), %v213_v1, %v212_v0  ;;  %v215_v4 = vld [vmem:[%s847_s1 + $0x18] sm:$0xff] (!%p150_p2)  ;;  %p179_p3 = scmp.lt.s32.totalorder (!%p150_p2), %s611_s20, 31  ;;  %709 = vset.pattern.permute.xlu1 (!%p150_p2), %v718_v5  ;;  %708 = vset.pattern.permute.xlu0 (!%p150_p2), %v718_v5 }
   0x7   : > { %v691_v6 = vpack.c.bf16 (!%p150_p2), %v215_v4, %v214_v2 }
   0x8   : > { %688 = vmatprep.subr.bf16.mxu0 (!%p150_p2), %v687_v3  ;;  %695 = vmatprep.subr.bf16.mxu1 (!%p150_p2), %v687_v3 }
   0x9   : > { %690 = vmatpush3.bf16.msra.mxu0 (!%p150_p2), %v687_v3  ;;  %697 = vmatpush3.bf16.msra.mxu1 (!%p150_p2), %v687_v3 }
   0xa   : > { %692 = vmatprep.subr.bf16.mxu0 (!%p150_p2), %v691_v6  ;;  %696 = vmatprep.subr.bf16.mxu1 (!%p150_p2), %v691_v6 }
   0xd   : > { %s851_s20 = smov (!%p179_p3, %s611_s20), 31  ;;  %694 = vmatpush3.bf16.msra.mxu0 %v691_v6  ;;  %698 = vmatpush3.bf16.msra.mxu1 %v691_v6 }
   0xe   : > { %s759_s23 = sshll.u32 %s851_s20, 3 }
   0xf   : > { %s765_s26 = scalar_lea.vmem %s846_s0, %s759_s23  ;;  %s779_s29 = scalar_lea.vmem %s848_s2, %s759_s23 }
  0x10   : > { %v196_v7 = vld [vmem:[%s765_s26] sm:$0xff]  ;;  %v197_v9 = vld [vmem:[%s765_s26 + $0x8] sm:$0xff]  ;;  %v198_v11 = vld [vmem:[%s765_s26 + $0x10] sm:$0xff]  ;;  %s825_s5 = scalar_lea.vmem %s849_s3, %s759_s23 }
  0x11   : > { %v204_v8 = vld [vmem:[%s765_s26 + $0x40] sm:$0xff]  ;;  %v205_v10 = vld [vmem:[%s765_s26 + $0x48] sm:$0xff]  ;;  %663 = vmatprep.mubr.msk.f32.mxu0 %vm216_vm0, %v196_v7  ;;  %v206_v12 = vld [vmem:[%s765_s26 + $0x50] sm:$0xff] }
  0x12   : > { %675 = vmatprep.mubr.msk.f32.mxu1 %vm216_vm0, %v204_v8  ;;  %664 = vmatmul.mubr.msk.f32.vlgmr.msra.gmra.mrb[0].mxu0 %vm216_vm0, %v197_v9  ;;  %v199_v13 = vld [vmem:[%s765_s26 + $0x18] sm:$0xff]  ;;  %v412_v15 = vld [vmem:[%s779_s29 + $0x10] sm:$0xff]  ;;  %v410_v16 = vld [vmem:[%s779_s29] sm:$0xff] }
  0x13   : > { %676 = vmatmul.mubr.msk.f32.vlgmr.msra.gmra.mrb[0].mxu1 %vm216_vm0, %v205_v10  ;;  %666 = vmatprep.mubr.msk.f32.mxu0 %vm216_vm0, %v198_v11  ;;  %v207_v14 = vld [vmem:[%s765_s26 + $0x58] sm:$0xff]  ;;  %v200_v17 = vld [vmem:[%s765_s26 + $0x20] sm:$0xff]  ;;  %v411_v20 = vld [vmem:[%s779_s29 + $0x8] sm:$0xff] }
  0x14   : > { %678 = vmatprep.mubr.msk.f32.mxu1 %vm216_vm0, %v206_v12  ;;  %v208_v18 = vld [vmem:[%s765_s26 + $0x60] sm:$0xff]  ;;  %438 = vperm.xlu1 %709, %v412_v15   ;;  %v413_v19 = vld [vmem:[%s779_s29 + $0x18] sm:$0xff]  ;;  %v201_v21 = vld [vmem:[%s765_s26 + $0x28] sm:$0xff] }
  0x15   : > { %428 = vperm.xlu0 %708, %v410_v16   ;;  %v209_v22 = vld [vmem:[%s765_s26 + $0x68] sm:$0xff]  ;;  %v202_v23 = vld [vmem:[%s765_s26 + $0x30] sm:$0xff]  ;;  %v414_v26 = vld [vmem:[%s779_s29 + $0x20] sm:$0xff] }
  0x16   : > { %667 = vmatmul.mubr.msk.f32.gmra.mrb[2].mxu0 %vm216_vm0, %v199_v13  ;;  %v210_v24 = vld [vmem:[%s765_s26 + $0x70] sm:$0xff]  ;;  %v415_v25 = vld [vmem:[%s779_s29 + $0x28] sm:$0xff]  ;;  %v203_v27 = vld [vmem:[%s765_s26 + $0x38] sm:$0xff] }
  0x17   : > { %679 = vmatmul.mubr.msk.f32.gmra.mrb[2].mxu1 %vm216_vm0, %v207_v14  ;;  %669 = vmatprep.mubr.msk.f32.mxu0 %vm216_vm0, %v200_v17  ;;  %v211_v28 = vld [vmem:[%s765_s26 + $0x78] sm:$0xff]  ;;  %v416_v30 = vld [vmem:[%s779_s29 + $0x30] sm:$0xff]  ;;  %v419_v31 = vld [vmem:[%s779_s29 + $0x48] sm:$0xff] }
  0x18   : > { %681 = vmatprep.mubr.msk.f32.mxu1 %vm216_vm0, %v208_v18  ;;  %443 = vperm.xlu1 %709, %v413_v19   ;;  %v417_v29 = vld [vmem:[%s779_s29 + $0x38] sm:$0xff]  ;;  %v418_v32 = vld [vmem:[%s779_s29 + $0x40] sm:$0xff]  ;;  %v420_v34 = vld [vmem:[%s779_s29 + $0x50] sm:$0xff] }
  0x19   : > { %433 = vperm.xlu0 %708, %v411_v20   ;;  %v421_v33 = vld [vmem:[%s779_s29 + $0x58] sm:$0xff]  ;;  %v423_v35 = vld [vmem:[%s779_s29 + $0x68] sm:$0xff]  ;;  %v422_v36 = vld [vmem:[%s779_s29 + $0x60] sm:$0xff] }
  0x1a   : > { %670 = vmatmul.mubr.msk.f32.gmra.mrb[4].mxu0 %vm216_vm0, %v201_v21  ;;  %v425_v37 = vld [vmem:[%s779_s29 + $0x78] sm:$0xff]  ;;  %v424_v38 = vld [vmem:[%s779_s29 + $0x70] sm:$0xff] }
  0x1b   : > { %682 = vmatmul.mubr.msk.f32.gmra.mrb[4].mxu1 %vm216_vm0, %v209_v22  ;;  %672 = vmatprep.mubr.msk.f32.mxu0 %vm216_vm0, %v202_v23 }
  0x1c   : > { %684 = vmatprep.mubr.msk.f32.mxu1 %vm216_vm0, %v210_v24  ;;  %453 = vperm.xlu1 %709, %v415_v25  }
  0x1d   : > { %448 = vperm.xlu0 %708, %v414_v26  }
  0x1e   : > { %673 = vmatmul.mubr.msk.f32.gmra.mrb[6].mxu0 %vm216_vm0, %v203_v27 }
  0x1f   : > { %685 = vmatmul.mubr.msk.f32.gmra.mrb[6].mxu1 %vm216_vm0, %v211_v28 }
  0x20   : > { %463 = vperm.xlu1 %709, %v417_v29  }
  0x21   : > { %458 = vperm.xlu0 %708, %v416_v30  }
  0x24   : > { %473 = vperm.xlu1 %709, %v419_v31  }
  0x25   : > { %468 = vperm.xlu0 %708, %v418_v32  }
  0x28   : > { %483 = vperm.xlu1 %709, %v421_v33  }
  0x29   : > { %478 = vperm.xlu0 %708, %v420_v34  }
  0x2c   : > { %493 = vperm.xlu1 %709, %v423_v35  }
  0x2d   : > { %488 = vperm.xlu0 %708, %v422_v36  }
  0x30   : > { %503 = vperm.xlu1 %709, %v425_v37  }
  0x31   : > { %498 = vperm.xlu0 %708, %v424_v38  }
  0x93   : > { %v439_v39 = vpop.permute.xlu1 %438 }
  0x94   : > { %v429_v40 = vpop.permute.xlu0 %428 }
  0x97   : > { %v444_v41 = vpop.permute.xlu1 %443 }
  0x98   : > { %v434_v42 = vpop.permute.xlu0 %433 }
  0x9b   : > { %v454_v43 = vpop.permute.xlu1 %453 }
  0x9c   : > { %v449_v44 = vpop.permute.xlu0 %448 }
  0x9f   : > { %v464_v45 = vpop.permute.xlu1 %463 }
  0xa0   : > { %v459_v46 = vpop.permute.xlu0 %458 }
  0xa3   : > { %v474_v47 = vpop.permute.xlu1 %473 }
  0xa4   : > { %v469_v48 = vpop.permute.xlu0 %468 }
  0xa7   : > { %v484_v49 = vpop.permute.xlu1 %483 }
  0xa8   : > { %v479_v50 = vpop.permute.xlu0 %478 }
  0xab   : > { %v494_v59 = vpop.permute.xlu1 %493 }
  0xac   : > { %v489_v60 = vpop.permute.xlu0 %488 }
  0xaf   : > { %v504_v13 = vpop.permute.xlu1 %503 }
  0xb0   : > { %v499_v14 = vpop.permute.xlu0 %498 }
  0xe5   : > { %v665_v51 = vpop.f32.mrb[0].mxu0 }
  0xe6   : > { %v677_v52 = vpop.f32.mrb[0].mxu1  ;;  %v507_v53 = vmul.f32 %v665_v51, %v434_v42  ;;  %v331_v55 = vpop.f32.mrb[1].mxu0 }
  0xe7   : > { %v515_v54 = vmul.f32 %v677_v52, %v474_v47  ;;  %v371_v56 = vpop.f32.mrb[1].mxu1  ;;  %v506_v57 = vmul.f32 %v429_v40, %v331_v55 }
  0xe8   : > { %v514_v58 = vmul.f32 %v469_v48, %v371_v56  ;;  %523 = vst [vmem:[%s825_s5 + $0x8] sm:$0xff] %v507_v53 }
  0xe9   : > { %531 = vst [vmem:[%s825_s5 + $0x48] sm:$0xff] %v515_v54  ;;  %522 = vst [vmem:[%s825_s5] sm:$0xff] %v506_v57  ;;  %v668_v61 = vpop.f32.mrb[2].mxu0 }
  0xea   : > { %530 = vst [vmem:[%s825_s5 + $0x40] sm:$0xff] %v514_v58  ;;  %v680_v62 = vpop.f32.mrb[2].mxu1  ;;  %v509_v63 = vmul.f32 %v668_v61, %v444_v41  ;;  %v341_v1 = vpop.f32.mrb[3].mxu0 }
  0xeb   : > { %v517_v0 = vmul.f32 %v680_v62, %v484_v49  ;;  %v381_v2 = vpop.f32.mrb[3].mxu1  ;;  %v508_v3 = vmul.f32 %v439_v39, %v341_v1 }
  0xec   : > { %v516_v4 = vmul.f32 %v479_v50, %v381_v2  ;;  %525 = vst [vmem:[%s825_s5 + $0x18] sm:$0xff] %v509_v63 }
  0xed   : > { %533 = vst [vmem:[%s825_s5 + $0x58] sm:$0xff] %v517_v0  ;;  %524 = vst [vmem:[%s825_s5 + $0x10] sm:$0xff] %v508_v3  ;;  %v671_v5 = vpop.f32.mrb[4].mxu0 }
  0xee   : > { %532 = vst [vmem:[%s825_s5 + $0x50] sm:$0xff] %v516_v4  ;;  %v683_v6 = vpop.f32.mrb[4].mxu1  ;;  %v511_v7 = vmul.f32 %v671_v5, %v454_v43  ;;  %v351_v9 = vpop.f32.mrb[5].mxu0 }
  0xef   : > { %v519_v8 = vmul.f32 %v683_v6, %v494_v59  ;;  %v391_v10 = vpop.f32.mrb[5].mxu1  ;;  %v510_v11 = vmul.f32 %v449_v44, %v351_v9 }
  0xf0   : > { %v518_v12 = vmul.f32 %v489_v60, %v391_v10  ;;  %527 = vst [vmem:[%s825_s5 + $0x28] sm:$0xff] %v511_v7 }
  0xf1   : > { %535 = vst [vmem:[%s825_s5 + $0x68] sm:$0xff] %v519_v8  ;;  %526 = vst [vmem:[%s825_s5 + $0x20] sm:$0xff] %v510_v11  ;;  %v674_v15 = vpop.f32.mrb[6].mxu0 }
  0xf2   : > { %534 = vst [vmem:[%s825_s5 + $0x60] sm:$0xff] %v518_v12  ;;  %v686_v16 = vpop.f32.mrb[6].mxu1  ;;  %v513_v17 = vmul.f32 %v674_v15, %v464_v45  ;;  %v361_v19 = vpop.f32.mrb[7].mxu0 }
  0xf3   : > { %v521_v18 = vmul.f32 %v686_v16, %v504_v13  ;;  %v401_v20 = vpop.f32.mrb[7].mxu1  ;;  %v512_v21 = vmul.f32 %v459_v46, %v361_v19 }
  0xf4   : > { %v520_v22 = vmul.f32 %v499_v14, %v401_v20  ;;  %529 = vst [vmem:[%s825_s5 + $0x38] sm:$0xff] %v513_v17 }
  0xf5   : > { %537 = vst [vmem:[%s825_s5 + $0x78] sm:$0xff] %v521_v18  ;;  %528 = vst [vmem:[%s825_s5 + $0x30] sm:$0xff] %v512_v21 }
  0xf6   : > { %536 = vst [vmem:[%s825_s5 + $0x70] sm:$0xff] %v520_v22 }
  0xf7 PF: > { %s13_s12 = sadd.s32 1, %s716_s12  }
  0xf8   : > { %p10_p4 = scmp.ge.s32.totalorder %s13_s12, 4  }
  0xfa   :  { %12 = sbr.rel (!%p10_p4) target bundleno = 1 (0x1), region = 65 }

// kernel: graph_conv.3
= control target key start
LH: loop header
LB: loop body
LE: loop exit
PB: predicated region body
PF: predicated region fallthrough
CT: control target
= control target key end

     0   :  { %s1188_s15 = smov 0   ;;  %s1190_s16 = smov 0   ;;  %s1396_s0 = inlined_call_operand.vmem [shape: f32[256,256], index: 0, kind: input, shape index: {}]   ;;  %s1397_s1 = inlined_call_operand.vmem [shape: f32[256,128], index: 1, kind: input, shape index: {}]   ;;  %s1398_s2 = inlined_call_operand.vmem [shape: f32[256,1], index: 2, kind: input, shape index: {}]   ;;  %s1399_s3 = inlined_call_operand.vmem [shape: f32[1,128], index: 3, kind: input, shape index: {}]   ;;  %s1400_s4 = inlined_call_operand.vmem [shape: f32[256,128], index: 4, kind: output, shape index: {}]  }
   0x1   :  { %s1192_s17 = smov 0   ;;  %s1194_s18 = smov 0  }
   0x2   :  { %s1196_s19 = smov 0   ;;  %s1198_s20 = smov 0  }
   0x3   :  { %s1200_s21 = smov 0  }
   0x4 LB: > { %s23_s22 = sadd.s32 1, %s1151_s19  ;;  %s26_s23 = sadd.s32 1, %s1155_s20  ;;  %s1159_s21 = sphi %s1200_s21, %s14_s21   ;;  %s1155_s20 = sphi %s1198_s20, %s1406_s20   ;;  %s1151_s19 = sphi %s1196_s19, %s1405_s19   ;;  %s1147_s18 = sphi %s1194_s18, %s1404_s18   ;;  %s1143_s17 = sphi %s1192_s17, %s1403_s17   ;;  %s1139_s16 = sphi %s1190_s16, %s1402_s16   ;;  %s1135_s15 = sphi %s1188_s15, %s1401_s15  }
   0x5   : > { %p24_p0 = scmp.ge.s32.totalorder %s23_s22, 2  ;;  %p42_p1 = scmp.ne.s32.totalorder %s1139_s16, %s1135_s15 }
   0x6   : > { %p43_p2 = scmp.eq.s32.totalorder %s1159_s21, 0  ;;  %s35_s27 = sadd.s32 1, %s1139_s16 }
   0x7   : > { %s1408_s22 = smov (%p24_p0, %s23_s22), 0  ;;  %s1410_s23 = smov (!%p24_p0, %s26_s23), %s1155_s20 }
   0x8   : > { %p44_p3 = por %p43_p2, %p42_p1  ;;  %p28_p4 = scmp.ge.s32.totalorder %s1410_s23, 2 }
   0x9   : > { %s31_s24 = ssub.s32 %s1151_s19, %s1408_s22  ;;  %p890_p6 = scmp.ge.s32.totalorder %s1159_s21, 4 }
   0xa   : > { %s1412_s23 = smov (%p28_p4, %s1410_s23), 0 }
   0xb   : > { %s30_s25 = ssub.s32 %s1155_s20, %s1412_s23  ;;  %170 = sbr.rel (%p890_p6) target bundleno = 32 (0x20), region = 20 }
   0xc   : > { %s32_s26 = sor.u32 %s31_s24, %s30_s25 }
   0xd   : > { %p33_p5 = scmp.eq.s32.totalorder %s32_s26, 0 }
   0xf   : > { %s1239_s28 = scalar_select %p33_p5, %s1139_s16, %s35_s27  }
  0x12   : > { %173 = sbr.rel (!%p44_p3) target bundleno = 32 (0x20), region = 24  ;;  %s175_s29 = sand.u32 (%p44_p3), 1, %s1139_s16  }
  0x13   : > { %s908_s30 = sshll.u32 (%p44_p3), %s1155_s20, 5  ;;  %s891_s5 = sshll.u32 (%p44_p3), %s175_s29, 7 }
  0x14   : > { %s180_s6 = sadd.s32 (%p44_p3), %s1151_s19, %s908_s30  ;;  %s177_s11 = scalar_lea.vmem (%p44_p3), [#allocation3], %s891_s5 }
  0x15   : > { %s894_s7 = sshll.u32 (%p44_p3), %s180_s6, 3 }
  0x16   : > { %s1248_s10 = scalar_lea.vmem (%p44_p3), %s1396_s0, %s894_s7 }
  0x17   : > { %v240_v0 = vld [vmem:[%s1248_s10] sm:$0xff] (%p44_p3)  ;;  %v242_v1 = vld [vmem:[%s1248_s10 + $0x10] sm:$0xff] (%p44_p3) }
  0x18   : > { %v244_v2 = vld [vmem:[%s1248_s10 + $0x20] sm:$0xff] (%p44_p3)  ;;  %241 = vst [vmem:[%s177_s11] sm:$0xff] (%p44_p3), %v240_v0  ;;  %243 = vst [vmem:[%s177_s11 + $0x8] sm:$0xff] (%p44_p3), %v242_v1  ;;  %v246_v3 = vld [vmem:[%s1248_s10 + $0x30] sm:$0xff] (%p44_p3) }
  0x19   : > { %245 = vst [vmem:[%s177_s11 + $0x10] sm:$0xff] %v244_v2  ;;  %v248_v4 = vld [vmem:[%s1248_s10 + $0x40] sm:$0xff]  ;;  %v250_v5 = vld [vmem:[%s1248_s10 + $0x50] sm:$0xff]  ;;  %247 = vst [vmem:[%s177_s11 + $0x18] sm:$0xff] %v246_v3 }
  0x1a   : > { %249 = vst [vmem:[%s177_s11 + $0x20] sm:$0xff] %v248_v4  ;;  %251 = vst [vmem:[%s177_s11 + $0x28] sm:$0xff] %v250_v5  ;;  %v252_v6 = vld [vmem:[%s1248_s10 + $0x60] sm:$0xff]  ;;  %v254_v7 = vld [vmem:[%s1248_s10 + $0x70] sm:$0xff] }
  0x1b   : > { %v256_v8 = vld [vmem:[%s1248_s10 + $0x80] sm:$0xff]  ;;  %253 = vst [vmem:[%s177_s11 + $0x30] sm:$0xff] %v252_v6  ;;  %255 = vst [vmem:[%s177_s11 + $0x38] sm:$0xff] %v254_v7  ;;  %v258_v9 = vld [vmem:[%s1248_s10 + $0x90] sm:$0xff] }
  0x1c   : > { %257 = vst [vmem:[%s177_s11 + $0x40] sm:$0xff] %v256_v8  ;;  %v260_v10 = vld [vmem:[%s1248_s10 + $0xa0] sm:$0xff]  ;;  %v262_v11 = vld [vmem:[%s1248_s10 + $0xb0] sm:$0xff]  ;;  %259 = vst [vmem:[%s177_s11 + $0x48] sm:$0xff] %v258_v9 }
  0x1d   : > { %261 = vst [vmem:[%s177_s11 + $0x50] sm:$0xff] %v260_v10  ;;  %263 = vst [vmem:[%s177_s11 + $0x58] sm:$0xff] %v262_v11  ;;  %v264_v12 = vld [vmem:[%s1248_s10 + $0xc0] sm:$0xff]  ;;  %v266_v13 = vld [vmem:[%s1248_s10 + $0xd0] sm:$0xff] }
  0x1e   : > { %v268_v14 = vld [vmem:[%s1248_s10 + $0xe0] sm:$0xff]  ;;  %265 = vst [vmem:[%s177_s11 + $0x60] sm:$0xff] %v264_v12  ;;  %267 = vst [vmem:[%s177_s11 + $0x68] sm:$0xff] %v266_v13  ;;  %v270_v15 = vld [vmem:[%s1248_s10 + $0xf0] sm:$0xff] }
  0x1f   : > { %269 = vst [vmem:[%s177_s11 + $0x70] sm:$0xff] %v268_v14  ;;  %271 = vst [vmem:[%s177_s11 + $0x78] sm:$0xff] %v270_v15 }
  0x20 PF: > { %p895_p7 = scmp.ge.s32.totalorder %s1159_s21, 1  ;;  %p294_p8 = scmp.lt.s32.totalorder %s1159_s21, 5 }
  0x22   : > { %p295_p9 = pnand %p895_p7, %p294_p8 }
  0x23   : > { %s301_s12 = sand.u32 (!%p295_p9), 1, %s1135_s15   ;;  %s897_s13 = sshll.u32 (!%p295_p9), %s1143_s17, 4 }
  0x24   : > { %298 = sbr.rel (%p295_p9) target bundleno = 436 (0x1b4), region = 70  ;;  %s896_s14 = sshll.u32 (!%p295_p9), %s301_s12, 7 }
  0x25   : > { %p338_p10 = scmp.lt.s32.totalorder (!%p295_p9), %s897_s13, 31  ;;  %s899_s24 = sshll.u32 (!%p295_p9), %s1147_s18, 4 }
  0x26   : > { %p344_p11 = scmp.lt.s32.totalorder (!%p295_p9), %s899_s24, 31  ;;  %s1286_s18 = scalar_lea.vmem (!%p295_p9), [#allocation3], %s896_s14 }
  0x27   : > { %p903_p12 = scmp.ne.s32.totalorder (!%p295_p9), %s1143_s17, 0 }
  0x2b   : > { %s1414_s13 = smov (!%p338_p10, %s897_s13), 31  ;;  %s1416_s24 = smov (!%p344_p11, %s899_s24), 31 }
  0x2c   : > { %s898_s25 = sshll.u32 %s1414_s13, 3  ;;  %s900_s30 = sshll.u32 %s1416_s24, 3  ;;  %v1161_v16 = vmov (!%p903_p12), 0.0  }
  0x2d   : > { %s1274_s29 = scalar_lea.vmem %s1397_s1, %s898_s25  ;;  %s1279_s7 = scalar_lea.vmem %s1398_s2, %s900_s30  ;;  %359 = vst [vmem:[#allocation2] sm:$0xff] (!%p903_p12), %v1161_v16  ;;  %360 = vst [vmem:[#allocation2 + $0x8] sm:$0xff] (!%p903_p12), %v1161_v16 }
  0x2e   : > { %s1284_s9 = scalar_lea.vmem %s1400_s4, %s900_s30  ;;  %358 = sbr.rel (%p903_p12) target bundleno = 53 (0x35), region = 78  ;;  %361 = vst [vmem:[#allocation2 + $0x10] sm:$0xff] (!%p903_p12), %v1161_v16  ;;  %362 = vst [vmem:[#allocation2 + $0x18] sm:$0xff] (!%p903_p12), %v1161_v16 }
  0x2f   : > { %363 = vst [vmem:[#allocation2 + $0x20] sm:$0xff] (!%p903_p12), %v1161_v16  ;;  %364 = vst [vmem:[#allocation2 + $0x28] sm:$0xff] (!%p903_p12), %v1161_v16 }
  0x30   : > { %365 = vst [vmem:[#allocation2 + $0x30] sm:$0xff] (!%p903_p12), %v1161_v16  ;;  %366 = vst [vmem:[#allocation2 + $0x38] sm:$0xff] (!%p903_p12), %v1161_v16 }
  0x31   : > { %367 = vst [vmem:[#allocation2 + $0x40] sm:$0xff] (!%p903_p12), %v1161_v16  ;;  %368 = vst [vmem:[#allocation2 + $0x48] sm:$0xff] (!%p903_p12), %v1161_v16 }
  0x32   : > { %369 = vst [vmem:[#allocation2 + $0x50] sm:$0xff] (!%p903_p12), %v1161_v16  ;;  %370 = vst [vmem:[#allocation2 + $0x58] sm:$0xff] (!%p903_p12), %v1161_v16 }
  0x33   : > { %371 = vst [vmem:[#allocation2 + $0x60] sm:$0xff] (!%p903_p12), %v1161_v16  ;;  %372 = vst [vmem:[#allocation2 + $0x68] sm:$0xff] (!%p903_p12), %v1161_v16 }
  0x34   : > { %373 = vst [vmem:[#allocation2 + $0x70] sm:$0xff] (!%p903_p12), %v1161_v16  ;;  %374 = vst [vmem:[#allocation2 + $0x78] sm:$0xff] (!%p903_p12), %v1161_v16 }
  0x35 PF: > { %v407_v17 = vld [vmem:[%s1274_s29] sm:$0xff]  ;;  %v408_v18 = vld [vmem:[%s1274_s29 + $0x8] sm:$0xff]  ;;  %v409_v19 = vld [vmem:[%s1274_s29 + $0x10] sm:$0xff]  ;;  %p904_p13 = scmp.ne.s32.totalorder %s1143_s17, 1 }
  0x36   : > { %v997_v20 = vpack.c.bf16 %v408_v18, %v407_v17  ;;  %v410_v21 = vld [vmem:[%s1274_s29 + $0x18] sm:$0xff]  ;;  %v411_v23 = vld [vmem:[%s1274_s29 + $0x20] sm:$0xff]  ;;  %v412_v24 = vld [vmem:[%s1274_s29 + $0x28] sm:$0xff] }
  0x37   : > { %v1001_v22 = vpack.c.bf16 %v410_v21, %v409_v19  ;;  %v1005_v25 = vpack.c.bf16 %v412_v24, %v411_v23  ;;  %v391_v26 = vld [vmem:[%s1286_s18] sm:$0xff]  ;;  %v413_v28 = vld [vmem:[%s1274_s29 + $0x30] sm:$0xff]  ;;  %v414_v29 = vld [vmem:[%s1274_s29 + $0x38] sm:$0xff] }
  0x38   : > { %998 = vmatprep.subr.bf16.mxu0 %v997_v20  ;;  %1029 = vmatprep.subr.bf16.mxu1 %v997_v20  ;;  %v399_v27 = vld [vmem:[%s1286_s18 + $0x40] sm:$0xff]  ;;  %v1009_v30 = vpack.c.bf16 %v414_v29, %v413_v28  ;;  %v416_v32 = vld [vmem:[%s1274_s29 + $0x48] sm:$0xff]  ;;  %v417_v34 = vld [vmem:[%s1274_s29 + $0x50] sm:$0xff] }
  0x39   : > { %1000 = vmatpush3.bf16.msra.mxu0 %v997_v20  ;;  %1037 = vmatpush3.bf16.msra.mxu1 %v997_v20  ;;  %v415_v31 = vld [vmem:[%s1274_s29 + $0x40] sm:$0xff]  ;;  %v418_v35 = vld [vmem:[%s1274_s29 + $0x58] sm:$0xff]  ;;  %v420_v38 = vld [vmem:[%s1274_s29 + $0x68] sm:$0xff] }
  0x3a   : > { %1002 = vmatprep.subr.bf16.mxu0 %v1001_v22  ;;  %1030 = vmatprep.subr.bf16.mxu1 %v1001_v22  ;;  %v1013_v33 = vpack.c.bf16 %v416_v32, %v415_v31  ;;  %v1017_v36 = vpack.c.bf16 %v418_v35, %v417_v34  ;;  %v419_v37 = vld [vmem:[%s1274_s29 + $0x60] sm:$0xff]  ;;  %v421_v40 = vld [vmem:[%s1274_s29 + $0x70] sm:$0xff]  ;;  %v422_v41 = vld [vmem:[%s1274_s29 + $0x78] sm:$0xff] }
  0x3b   : > { %973 = vmatprep.mubr.f32.mxu0 %v391_v26  ;;  %985 = vmatprep.mubr.f32.mxu1 %v399_v27  ;;  %v1021_v39 = vpack.c.bf16 %v420_v38, %v419_v37  ;;  %v1025_v42 = vpack.c.bf16 %v422_v41, %v421_v40  ;;  %v392_v43 = vld [vmem:[%s1286_s18 + $0x8] sm:$0xff]  ;;  %v393_v45 = vld [vmem:[%s1286_s18 + $0x10] sm:$0xff]  ;;  %v394_v47 = vld [vmem:[%s1286_s18 + $0x18] sm:$0xff] }
  0x3c   : > { %v400_v44 = vld [vmem:[%s1286_s18 + $0x48] sm:$0xff]  ;;  %v401_v46 = vld [vmem:[%s1286_s18 + $0x50] sm:$0xff]  ;;  %v402_v48 = vld [vmem:[%s1286_s18 + $0x58] sm:$0xff] }
  0x3d   : > { %1004 = vmatpush3.bf16.msra.mxu0 %v1001_v22  ;;  %1038 = vmatpush3.bf16.msra.mxu1 %v1001_v22  ;;  %v395_v49 = vld [vmem:[%s1286_s18 + $0x20] sm:$0xff]  ;;  %v396_v51 = vld [vmem:[%s1286_s18 + $0x28] sm:$0xff]  ;;  %v397_v53 = vld [vmem:[%s1286_s18 + $0x30] sm:$0xff] }
  0x3e   : > { %1006 = vmatprep.subr.bf16.mxu0 %v1005_v25  ;;  %1031 = vmatprep.subr.bf16.mxu1 %v1005_v25  ;;  %v403_v50 = vld [vmem:[%s1286_s18 + $0x60] sm:$0xff]  ;;  %v404_v52 = vld [vmem:[%s1286_s18 + $0x68] sm:$0xff]  ;;  %v405_v54 = vld [vmem:[%s1286_s18 + $0x70] sm:$0xff] }
  0x3f   : > { %v398_v55 = vld [vmem:[%s1286_s18 + $0x38] sm:$0xff]  ;;  %v376_v57 = vld [vmem:[#allocation2 + $0x8] sm:$0xff]  ;;  %v375_v59 = vld [vmem:[#allocation2] sm:$0xff] }
  0x40   : > { %v406_v56 = vld [vmem:[%s1286_s18 + $0x78] sm:$0xff]  ;;  %v384_v58 = vld [vmem:[#allocation2 + $0x48] sm:$0xff]  ;;  %v383_v60 = vld [vmem:[#allocation2 + $0x40] sm:$0xff] }
  0x41   : > { %1008 = vmatpush3.bf16.msra.mxu0 %v1005_v25  ;;  %1039 = vmatpush3.bf16.msra.mxu1 %v1005_v25  ;;  %v378_v5 = vld [vmem:[#allocation2 + $0x18] sm:$0xff]  ;;  %v377_v7 = vld [vmem:[#allocation2 + $0x10] sm:$0xff]  ;;  %v380_v17 = vld [vmem:[#allocation2 + $0x28] sm:$0xff] }
  0x42   : > { %1010 = vmatprep.subr.bf16.mxu0 %v1009_v30  ;;  %1032 = vmatprep.subr.bf16.mxu1 %v1009_v30  ;;  %v386_v6 = vld [vmem:[#allocation2 + $0x58] sm:$0xff]  ;;  %v385_v8 = vld [vmem:[#allocation2 + $0x50] sm:$0xff]  ;;  %v388_v18 = vld [vmem:[#allocation2 + $0x68] sm:$0xff] }
  0x43   : > { %v379_v19 = vld [vmem:[#allocation2 + $0x20] sm:$0xff]  ;;  %v382_v29 = vld [vmem:[#allocation2 + $0x38] sm:$0xff]  ;;  %v381_v31 = vld [vmem:[#allocation2 + $0x30] sm:$0xff] }
  0x44   : > { %v387_v20 = vld [vmem:[#allocation2 + $0x60] sm:$0xff]  ;;  %v389_v32 = vld [vmem:[#allocation2 + $0x70] sm:$0xff] }
  0x45   : > { %1012 = vmatpush3.bf16.msra.mxu0 %v1009_v30  ;;  %1040 = vmatpush3.bf16.msra.mxu1 %v1009_v30  ;;  %v390_v30 = vld [vmem:[#allocation2 + $0x78] sm:$0xff]  ;;  %v622_v41 = vld [vmem:[%s1279_s7 + $0x10] sm:$0xff] (!%p904_p13) }
  0x46   : > { %1014 = vmatprep.subr.bf16.mxu0 %v1013_v33  ;;  %1033 = vmatprep.subr.bf16.mxu1 %v1013_v33 }
  0x49   : > { %1016 = vmatpush3.bf16.msra.mxu0 %v1013_v33  ;;  %1041 = vmatpush3.bf16.msra.mxu1 %v1013_v33 }
  0x4a   : > { %1018 = vmatprep.subr.bf16.mxu0 %v1017_v36  ;;  %1034 = vmatprep.subr.bf16.mxu1 %v1017_v36 }
  0x4d   : > { %1020 = vmatpush3.bf16.msra.mxu0 %v1017_v36  ;;  %1042 = vmatpush3.bf16.msra.mxu1 %v1017_v36 }
  0x4e   : > { %1022 = vmatprep.subr.bf16.mxu0 %v1021_v39  ;;  %1035 = vmatprep.subr.bf16.mxu1 %v1021_v39 }
  0x51   : > { %1024 = vmatpush3.bf16.msra.mxu0 %v1021_v39  ;;  %1043 = vmatpush3.bf16.msra.mxu1 %v1021_v39 }
  0x52   : > { %1026 = vmatprep.subr.bf16.mxu0 %v1025_v42  ;;  %1036 = vmatprep.subr.bf16.mxu1 %v1025_v42 }
  0x55   : > { %1028 = vmatpush3.bf16.msra.mxu0 %v1025_v42  ;;  %1044 = vmatpush3.bf16.msra.mxu1 %v1025_v42  ;;  %v620_v42 = vld [vmem:[%s1279_s7] sm:$0xff] (!%p904_p13) }
  0x58   : > { %974 = vmatmul.mubr.f32.vlgmr.msra.gmra.mrb[0].mxu0 %v392_v43  ;;  %986 = vmatmul.mubr.f32.vlgmr.msra.gmra.mrb[0].mxu1 %v400_v44  ;;  %v1162_v43 = vmov (!%p904_p13), 0   ;;  %v623_v44 = vld [vmem:[%s1279_s7 + $0x18] sm:$0xff] (!%p904_p13) }
  0x59   : > { %976 = vmatprep.mubr.f32.mxu0 %v393_v45  ;;  %988 = vmatprep.mubr.f32.mxu1 %v401_v46  ;;  %v621_v45 = vld [vmem:[%s1279_s7 + $0x8] sm:$0xff] (!%p904_p13) }
  0x5a   : > { %1104 = vset.pattern.permute.xlu1 (!%p904_p13), %v1162_v43  ;;  %1103 = vset.pattern.permute.xlu0 (!%p904_p13), %v1162_v43  ;;  %v625_v46 = vld [vmem:[%s1279_s7 + $0x28] sm:$0xff] (!%p904_p13) }
  0x5b   : > { %648 = vperm.xlu1 (!%p904_p13), %1104, %v622_v41   ;;  %638 = vperm.xlu0 (!%p904_p13), %1103, %v620_v42  }
  0x5c   : > { %977 = vmatmul.mubr.f32.gmra.mrb[2].mxu0 %v394_v47  ;;  %989 = vmatmul.mubr.f32.gmra.mrb[2].mxu1 %v402_v48  ;;  %v624_v47 = vld [vmem:[%s1279_s7 + $0x20] sm:$0xff] (!%p904_p13)  ;;  %v627_v48 = vld [vmem:[%s1279_s7 + $0x38] sm:$0xff] (!%p904_p13) }
  0x5d   : > { %979 = vmatprep.mubr.f32.mxu0 %v395_v49  ;;  %991 = vmatprep.mubr.f32.mxu1 %v403_v50  ;;  %v626_v49 = vld [vmem:[%s1279_s7 + $0x30] sm:$0xff] (!%p904_p13)  ;;  %v629_v50 = vld [vmem:[%s1279_s7 + $0x48] sm:$0xff] (!%p904_p13) }
  0x5f   : > { %653 = vperm.xlu1 (!%p904_p13), %1104, %v623_v44   ;;  %643 = vperm.xlu0 (!%p904_p13), %1103, %v621_v45  }
  0x60   : > { %980 = vmatmul.mubr.f32.gmra.mrb[4].mxu0 %v396_v51  ;;  %992 = vmatmul.mubr.f32.gmra.mrb[4].mxu1 %v404_v52  ;;  %v628_v51 = vld [vmem:[%s1279_s7 + $0x40] sm:$0xff] (!%p904_p13)  ;;  %v631_v52 = vld [vmem:[%s1279_s7 + $0x58] sm:$0xff] (!%p904_p13) }
  0x61   : > { %982 = vmatprep.mubr.f32.mxu0 %v397_v53  ;;  %994 = vmatprep.mubr.f32.mxu1 %v405_v54  ;;  %v630_v53 = vld [vmem:[%s1279_s7 + $0x50] sm:$0xff] (!%p904_p13)  ;;  %v633_v54 = vld [vmem:[%s1279_s7 + $0x68] sm:$0xff] (!%p904_p13) }
  0x63   : > { %663 = vperm.xlu1 (!%p904_p13), %1104, %v625_v46   ;;  %658 = vperm.xlu0 (!%p904_p13), %1103, %v624_v47  }
  0x64   : > { %983 = vmatmul.mubr.f32.gmra.mrb[6].mxu0 %v398_v55  ;;  %995 = vmatmul.mubr.f32.gmra.mrb[6].mxu1 %v406_v56  ;;  %v632_v55 = vld [vmem:[%s1279_s7 + $0x60] sm:$0xff] (!%p904_p13)  ;;  %v635_v56 = vld [vmem:[%s1279_s7 + $0x78] sm:$0xff] (!%p904_p13) }
  0x67   : > { %673 = vperm.xlu1 (!%p904_p13), %1104, %v627_v48   ;;  %668 = vperm.xlu0 (!%p904_p13), %1103, %v626_v49  }
  0x6b   : > { %683 = vperm.xlu1 (!%p904_p13), %1104, %v629_v50   ;;  %678 = vperm.xlu0 (!%p904_p13), %1103, %v628_v51  }
  0x6f   : > { %693 = vperm.xlu1 (!%p904_p13), %1104, %v631_v52   ;;  %688 = vperm.xlu0 (!%p904_p13), %1103, %v630_v53  }
  0x73   : > { %703 = vperm.xlu1 (!%p904_p13), %1104, %v633_v54   ;;  %698 = vperm.xlu0 (!%p904_p13), %1103, %v632_v55  }
  0x77   : > { %713 = vperm.xlu1 (!%p904_p13), %1104, %v635_v56  }
 0x12b   : > { %v975_v61 = vpop.f32.mrb[0].mxu0  ;;  %v987_v62 = vpop.f32.mrb[0].mxu1 }
 0x12c   : > { %v569_v63 = vadd.f32 %v975_v61, %v376_v57  ;;  %v577_v0 = vadd.f32 %v987_v62, %v384_v58  ;;  %v489_v1 = vpop.f32.mrb[1].mxu0  ;;  %v529_v2 = vpop.f32.mrb[1].mxu1  ;;  %v634_v57 = vld [vmem:[%s1279_s7 + $0x70] sm:$0xff] (!%p904_p13) }
 0x12d   : > { %v568_v3 = vadd.f32 %v489_v1, %v375_v59  ;;  %v576_v4 = vadd.f32 %v529_v2, %v383_v60  ;;  %708 = vperm.xlu0 (!%p904_p13), %1103, %v634_v57   ;;  %v1341_v60 = vld [vmem:[%s1399_s3] ss:$0 sm:$0xff] (!%p904_p13)  ;;  %v649_v61 = vpop.permute.xlu1 (!%p904_p13), %648  ;;  %v639_v62 = vpop.permute.xlu0 (!%p904_p13), %638 }
 0x12e   : > { %585 = vst [vmem:[#allocation2 + $0x8] sm:$0xff] %v569_v63  ;;  %593 = vst [vmem:[#allocation2 + $0x48] sm:$0xff] %v577_v0 }
 0x12f   : > { %584 = vst [vmem:[#allocation2] sm:$0xff] %v568_v3  ;;  %592 = vst [vmem:[#allocation2 + $0x40] sm:$0xff] %v576_v4  ;;  %v978_v9 = vpop.f32.mrb[2].mxu0  ;;  %v990_v10 = vpop.f32.mrb[2].mxu1 }
 0x130   : > { %v571_v11 = vadd.f32 %v978_v9, %v378_v5  ;;  %v579_v12 = vadd.f32 %v990_v10, %v386_v6  ;;  %v499_v13 = vpop.f32.mrb[3].mxu0  ;;  %v539_v14 = vpop.f32.mrb[3].mxu1 }
 0x131   : > { %v570_v15 = vadd.f32 %v499_v13, %v377_v7  ;;  %v578_v16 = vadd.f32 %v539_v14, %v385_v8  ;;  %v654_v5 = vpop.permute.xlu1 (!%p904_p13), %653  ;;  %v644_v6 = vpop.permute.xlu0 (!%p904_p13), %643 }
 0x132   : > { %587 = vst [vmem:[#allocation2 + $0x18] sm:$0xff] %v571_v11  ;;  %595 = vst [vmem:[#allocation2 + $0x58] sm:$0xff] %v579_v12 }
 0x133   : > { %586 = vst [vmem:[#allocation2 + $0x10] sm:$0xff] %v570_v15  ;;  %594 = vst [vmem:[#allocation2 + $0x50] sm:$0xff] %v578_v16  ;;  %v981_v21 = vpop.f32.mrb[4].mxu0  ;;  %v993_v22 = vpop.f32.mrb[4].mxu1 }
 0x134   : > { %v573_v23 = vadd.f32 %v981_v21, %v380_v17  ;;  %v581_v24 = vadd.f32 %v993_v22, %v388_v18  ;;  %v509_v25 = vpop.f32.mrb[5].mxu0  ;;  %v549_v26 = vpop.f32.mrb[5].mxu1 }
 0x135   : > { %v572_v27 = vadd.f32 %v509_v25, %v379_v19  ;;  %v580_v28 = vadd.f32 %v549_v26, %v387_v20  ;;  %603 = sbr.rel (%p904_p13) target bundleno = 436 (0x1b4), region = 82  ;;  %v605_v2 = vld [vmem:[#allocation2 + $0x8] sm:$0xff] (!%p904_p13)  ;;  %v664_v15 = vpop.permute.xlu1 (!%p904_p13), %663  ;;  %v659_v16 = vpop.permute.xlu0 (!%p904_p13), %658 }
 0x136   : > { %589 = vst [vmem:[#allocation2 + $0x28] sm:$0xff] %v573_v23  ;;  %597 = vst [vmem:[#allocation2 + $0x68] sm:$0xff] %v581_v24  ;;  %v604_v59 = vld [vmem:[#allocation2] sm:$0xff] (!%p904_p13)  ;;  %v717_v10 = vmul.f32 (!%p904_p13), %v644_v6, %v605_v2 }
 0x137   : > { %588 = vst [vmem:[#allocation2 + $0x20] sm:$0xff] %v572_v27  ;;  %596 = vst [vmem:[#allocation2 + $0x60] sm:$0xff] %v580_v28  ;;  %v984_v33 = vpop.f32.mrb[6].mxu0  ;;  %v996_v34 = vpop.f32.mrb[6].mxu1  ;;  %v716_v0 = vmul.f32 (!%p904_p13), %v639_v62, %v604_v59 }
 0x138   : > { %v575_v35 = vadd.f32 %v984_v33, %v382_v29  ;;  %v583_v36 = vadd.f32 %v996_v34, %v390_v30  ;;  %v519_v37 = vpop.f32.mrb[7].mxu0  ;;  %v559_v38 = vpop.f32.mrb[7].mxu1  ;;  %v740_v14 = vadd.f32 (!%p904_p13), %v1341_v60, %v717_v10 }
 0x139   : > { %v574_v39 = vadd.f32 %v519_v37, %v381_v31  ;;  %v582_v40 = vadd.f32 %v559_v38, %v389_v32  ;;  %v607_v1 = vld [vmem:[#allocation2 + $0x18] sm:$0xff] (!%p904_p13)  ;;  %v739_v4 = vadd.f32 (!%p904_p13), %v1341_v60, %v716_v0  ;;  %v674_v25 = vpop.permute.xlu1 (!%p904_p13), %673  ;;  %v669_v26 = vpop.permute.xlu0 (!%p904_p13), %668  ;;  %v613_v31 = vld [vmem:[#allocation2 + $0x48] sm:$0xff] (!%p904_p13)  ;;  %v612_v32 = vld [vmem:[#allocation2 + $0x40] sm:$0xff] (!%p904_p13) }
 0x13a   : > { %591 = vst [vmem:[#allocation2 + $0x38] sm:$0xff] %v575_v35  ;;  %599 = vst [vmem:[#allocation2 + $0x78] sm:$0xff] %v583_v36  ;;  %v606_v58 = vld [vmem:[#allocation2 + $0x10] sm:$0xff] (!%p904_p13)  ;;  %v719_v9 = vmul.f32 (!%p904_p13), %v654_v5, %v607_v1  ;;  %v756_v18 = vmax.f32 (!%p904_p13), %v740_v14, 0.0  ;;  %v615_v41 = vld [vmem:[#allocation2 + $0x58] sm:$0xff] (!%p904_p13) }
 0x13b   : > { %590 = vst [vmem:[#allocation2 + $0x30] sm:$0xff] %v574_v39  ;;  %598 = vst [vmem:[#allocation2 + $0x70] sm:$0xff] %v582_v40  ;;  %v718_v63 = vmul.f32 (!%p904_p13), %v649_v61, %v606_v58  ;;  %v755_v8 = vmax.f32 (!%p904_p13), %v739_v4, 0.0  ;;  %v614_v42 = vld [vmem:[#allocation2 + $0x50] sm:$0xff] (!%p904_p13) }
 0x13c   : > { %v742_v13 = vadd.f32 %v1341_v60, %v719_v9  ;;  %772 = vst [vmem:[%s1284_s9 + $0x8] sm:$0xff] %v756_v18 }
 0x13d   : > { %v741_v3 = vadd.f32 %v1341_v60, %v718_v63  ;;  %v609_v11 = vld [vmem:[#allocation2 + $0x28] sm:$0xff]  ;;  %771 = vst [vmem:[%s1284_s9] sm:$0xff] %v755_v8  ;;  %v684_v35 = vpop.permute.xlu1 %683  ;;  %v679_v36 = vpop.permute.xlu0 %678 }
 0x13e   : > { %v608_v12 = vld [vmem:[#allocation2 + $0x20] sm:$0xff]  ;;  %v758_v17 = vmax.f32 %v742_v13, 0.0  ;;  %v721_v19 = vmul.f32 %v664_v15, %v609_v11  ;;  %v725_v39 = vmul.f32 %v684_v35, %v613_v31  ;;  %v724_v40 = vmul.f32 %v679_v36, %v612_v32  ;;  %v617_v51 = vld [vmem:[#allocation2 + $0x68] sm:$0xff] }
 0x13f   : > { %v757_v7 = vmax.f32 %v741_v3, 0.0  ;;  %v720_v20 = vmul.f32 %v659_v16, %v608_v12  ;;  %v616_v52 = vld [vmem:[#allocation2 + $0x60] sm:$0xff] }
 0x140   : > { %774 = vst [vmem:[%s1284_s9 + $0x18] sm:$0xff] %v758_v17  ;;  %v744_v23 = vadd.f32 %v1341_v60, %v721_v19  ;;  %v748_v43 = vadd.f32 %v1341_v60, %v725_v39  ;;  %v747_v44 = vadd.f32 %v1341_v60, %v724_v40 }
 0x141   : > { %773 = vst [vmem:[%s1284_s9 + $0x10] sm:$0xff] %v757_v7  ;;  %v611_v21 = vld [vmem:[#allocation2 + $0x38] sm:$0xff]  ;;  %v743_v24 = vadd.f32 %v1341_v60, %v720_v20  ;;  %v694_v45 = vpop.permute.xlu1 %693  ;;  %v689_v46 = vpop.permute.xlu0 %688 }
 0x142   : > { %v610_v22 = vld [vmem:[#allocation2 + $0x30] sm:$0xff]  ;;  %v760_v27 = vmax.f32 %v744_v23, 0.0  ;;  %v723_v29 = vmul.f32 %v674_v25, %v611_v21  ;;  %v764_v47 = vmax.f32 %v748_v43, 0.0  ;;  %v763_v48 = vmax.f32 %v747_v44, 0.0  ;;  %v619_v62 = vld [vmem:[#allocation2 + $0x78] sm:$0xff] }
 0x143   : > { %v759_v28 = vmax.f32 %v743_v24, 0.0  ;;  %v722_v30 = vmul.f32 %v669_v26, %v610_v22  ;;  %v727_v49 = vmul.f32 %v694_v45, %v615_v41  ;;  %v726_v50 = vmul.f32 %v689_v46, %v614_v42  ;;  %v618_v63 = vld [vmem:[#allocation2 + $0x70] sm:$0xff] }
 0x144   : > { %776 = vst [vmem:[%s1284_s9 + $0x28] sm:$0xff] %v760_v27  ;;  %v746_v33 = vadd.f32 %v1341_v60, %v723_v29  ;;  %780 = vst [vmem:[%s1284_s9 + $0x48] sm:$0xff] %v764_v47 }
 0x145   : > { %775 = vst [vmem:[%s1284_s9 + $0x20] sm:$0xff] %v759_v28  ;;  %v745_v34 = vadd.f32 %v1341_v60, %v722_v30  ;;  %779 = vst [vmem:[%s1284_s9 + $0x40] sm:$0xff] %v763_v48  ;;  %v750_v53 = vadd.f32 %v1341_v60, %v727_v49  ;;  %v749_v54 = vadd.f32 %v1341_v60, %v726_v50  ;;  %v704_v55 = vpop.permute.xlu1 %703  ;;  %v699_v56 = vpop.permute.xlu0 %698 }
 0x146   : > { %v762_v37 = vmax.f32 %v746_v33, 0.0  ;;  %v729_v59 = vmul.f32 %v704_v55, %v617_v51  ;;  %v728_v61 = vmul.f32 %v699_v56, %v616_v52 }
 0x147   : > { %v761_v38 = vmax.f32 %v745_v34, 0.0  ;;  %v766_v57 = vmax.f32 %v750_v53, 0.0  ;;  %v765_v58 = vmax.f32 %v749_v54, 0.0 }
 0x148   : > { %778 = vst [vmem:[%s1284_s9 + $0x38] sm:$0xff] %v762_v37  ;;  %v752_v0 = vadd.f32 %v1341_v60, %v729_v59  ;;  %v751_v1 = vadd.f32 %v1341_v60, %v728_v61 }
 0x149   : > { %777 = vst [vmem:[%s1284_s9 + $0x30] sm:$0xff] %v761_v38  ;;  %782 = vst [vmem:[%s1284_s9 + $0x58] sm:$0xff] %v766_v57  ;;  %v714_v2 = vpop.permute.xlu1 %713 }
 0x14a   : > { %781 = vst [vmem:[%s1284_s9 + $0x50] sm:$0xff] %v765_v58  ;;  %v768_v4 = vmax.f32 %v752_v0, 0.0  ;;  %v767_v5 = vmax.f32 %v751_v1, 0.0  ;;  %v731_v6 = vmul.f32 %v714_v2, %v619_v62 }
 0x14c   : > { %784 = vst [vmem:[%s1284_s9 + $0x68] sm:$0xff] %v768_v4  ;;  %783 = vst [vmem:[%s1284_s9 + $0x60] sm:$0xff] %v767_v5  ;;  %v754_v8 = vadd.f32 %v1341_v60, %v731_v6 }
 0x14e   : > { %v770_v10 = vmax.f32 %v754_v8, 0.0 }
 0x150   : > { %786 = vst [vmem:[%s1284_s9 + $0x78] sm:$0xff] %v770_v10 }
 0x1ac   : > { %v709_v3 = vpop.permute.xlu0 %708 }
 0x1ad   : > { %v730_v7 = vmul.f32 %v709_v3, %v618_v63 }
 0x1af   : > { %v753_v9 = vadd.f32 %v1341_v60, %v730_v7 }
 0x1b1   : > { %v769_v11 = vmax.f32 %v753_v9, 0.0 }
 0x1b3   : > { %785 = vst [vmem:[%s1284_s9 + $0x70] sm:$0xff] %v769_v11 }
 0x1b4 PF: > { %s14_s21 = sadd.s32 1, %s1159_s21   ;;  %s1401_s15 = smov %s1139_s16 }
 0x1b5   : > { %p11_p0 = scmp.ge.s32.totalorder %s14_s21, 6   ;;  %s1402_s16 = smov %s1239_s28 }
 0x1b6   : > { %s1403_s17 = smov %s1151_s19  ;;  %s1404_s18 = smov %s1155_s20 }
 0x1b7   : > { %s1405_s19 = smov %s1408_s22  ;;  %s1406_s20 = smov %s1412_s23 }
 0x1b8   :  { %13 = sbr.rel (!%p11_p0) target bundleno = 4 (0x4), region = 123 }

</bundles_post_ra>
